<compile_context>
chip_gen: v7x
topology: tpu7x:2x2x1
jax: 0.10.0
libtpu: 0.0.40
codegen_flags: <defaults>
</compile_context>

<pallas_src>
import jax
import jax.numpy as jnp
from jax import lax
from jax.experimental import pallas as pl
from jax.experimental.pallas import tpu as pltpu

LANES = 128


def _round_up(x, m):
    return ((x + m - 1) // m) * m


def atom_embedding_kernel(ids_ref, table_ref, out_ref):
    # ids_ref:   (TN, 1)      int32   — tile of atomic numbers
    # table_ref: (Vp, Ep)     float32 — full padded embedding table (resident)
    # out_ref:   (TN, Ep)     float32 — gathered embeddings for this tile
    ids = ids_ref[...]                                   # (TN, 1)
    tn = ids.shape[0]
    vocab = table_ref.shape[0]                           # multiple of 128
    # Build one-hot(ids) on the VPU, gather rows via a single MXU matmul.
    col = lax.broadcasted_iota(jnp.int32, (tn, vocab), 1)
    onehot = (ids == col).astype(table_ref.dtype)        # (TN, Vp)
    out = jnp.dot(onehot, table_ref[...], preferred_element_type=jnp.float32)
    out_ref[...] = out.astype(out_ref.dtype)             # lane-dense store


def atom_embedding(atomic_numbers, table, *, tile_n=128):
    """Embedding lookup: (N,) int ids x (V, E) f32 table -> (N, E) f32."""
    n = atomic_numbers.shape[0]
    v, e = table.shape

    # ---- one-time host-side layout prep (all static, all tiny) -------------
    # Pad vocab to a multiple of 128: clean one-hot lanes / MXU contraction.
    v_pad = _round_up(v, LANES)
    # Pad emb dim to a multiple of 128: unmasked, lane-dense output stores.
    e_pad = _round_up(e, LANES)
    if (v_pad, e_pad) != (v, e):
        table = jnp.pad(table, ((0, v_pad - v), (0, e_pad - e)))

    # Pad N up to the tile (id 0 for pad rows; they are dropped below) so the
    # grid is exact even for awkward atom counts.
    n_pad = _round_up(max(n, 1), tile_n)
    ids = atomic_numbers.astype(jnp.int32)
    if n_pad != n:
        ids = jnp.pad(ids, (0, n_pad - n))
    ids2d = ids.reshape(n_pad, 1)

    grid = (n_pad // tile_n,)
    out = pl.pallas_call(
        atom_embedding_kernel,
        out_shape=jax.ShapeDtypeStruct((n_pad, e_pad), table.dtype),
        grid_spec=pltpu.PrefetchScalarGridSpec(
            num_scalar_prefetch=0,
            grid=grid,
            in_specs=[
                pl.BlockSpec((tile_n, 1), lambda i: (i, 0)),     # ids tile
                # Full table resident every step (~64 KB at 128x128 f32).
                # TODO(synk): for a large table, use pipeline_mode=
                # pl.Buffered(1) or memory_space=pl.ANY + manual DMA to avoid
                # a second resident copy (matters first on v7x's 64 MiB VMEM).
                pl.BlockSpec((v_pad, e_pad), lambda i: (0, 0)),
            ],
            out_specs=pl.BlockSpec((tile_n, e_pad), lambda i: (i, 0)),
        ),
        compiler_params=pltpu.CompilerParams(
            dimension_semantics=("parallel",),
        ),
    )(ids2d, table)

    # Drop the N / E padding (tiny copy outside the kernel).
    return out[:n, :e]


if __name__ == "__main__":
    key = jax.random.PRNGKey(0)
    k_tab, k_ids, k_ids2 = jax.random.split(key, 3)

    emb_size = 32
    max_atomic_number = 100          # vocab = max_atomic_number + 1
    vocab = max_atomic_number + 1
    n_atoms = 16

    # torch.nn.Embedding default init is N(0, 1).
    table = jax.random.normal(k_tab, (vocab, emb_size), dtype=jnp.float32)

    # Example atomic numbers in [1, max_atomic_number].
    atomic_numbers = jax.random.randint(
        k_ids, (n_atoms,), 1, max_atomic_number + 1, dtype=jnp.int32
    )
    print("Atomic types hitting atom_emb:", atomic_numbers)

    out = atom_embedding(atomic_numbers, table)
    out = jax.block_until_ready(out)
    ref = jnp.take(table, atomic_numbers, axis=0)
    assert out.shape == (n_atoms, emb_size)
    assert jnp.allclose(out, ref, atol=1e-5, rtol=1e-5)

    # Second check: non-multiple-of-tile N with a multi-step grid (tail path).
    n_big = 300
    ids_big = jax.random.randint(
        k_ids2, (n_big,), 1, max_atomic_number + 1, dtype=jnp.int32
    )
    out_big = jax.block_until_ready(atom_embedding(ids_big, table))
    ref_big = jnp.take(table, ids_big, axis=0)
    assert out_big.shape == (n_big, emb_size)
    assert jnp.allclose(out_big, ref_big, atol=1e-5, rtol=1e-5)

    print("KERNEL_OK")
</pallas_src>

<mosaic_0001>
module attributes {stable_mosaic.version = 11 : i64} {
  func.func @atom_embedding_kernel(%arg0: i32, %arg1: memref<128x1xi32, #tpu.memory_space<vmem>>, %arg2: memref<128x128xf32, #tpu.memory_space<vmem>>, %arg3: memref<128x128xf32, #tpu.memory_space<vmem>>) attributes {dimension_semantics = [#tpu.dimension_semantics<parallel>], iteration_bounds = array<i64: 1>, scalar_prefetch = 0 : i64, scratch_operands = 0 : i64, tpu.core_type = #tpu.core_type<tc>, window_params = [{transform_indices = @transform_0, window_bounds = array<i64: 128, 1>}, {pipeline_mode = #tpu.pipeline_mode<synchronous>, transform_indices = @transform_1, window_bounds = array<i64: 128, 128>}, {transform_indices = @transform_2, window_bounds = array<i64: 128, 128>}]} {
    %c0 = arith.constant 0 : index
    %c0_0 = arith.constant 0 : index
    %0 = vector.load %arg1[%c0, %c0_0] : memref<128x1xi32, #tpu.memory_space<vmem>>, vector<128x1xi32>
    %1 = tpu.iota {dimensions = array<i32: 1>} : vector<128x128xi32>
    %2 = vector.broadcast %0 : vector<128x1xi32> to vector<128x128xi32>
    %3 = arith.cmpi eq, %2, %1 : vector<128x128xi32>
    %4 = arith.extui %3 : vector<128x128xi1> to vector<128x128xi32>
    %5 = arith.sitofp %4 : vector<128x128xi32> to vector<128x128xf32>
    %c0_1 = arith.constant 0 : index
    %c0_2 = arith.constant 0 : index
    %6 = vector.load %arg2[%c0_1, %c0_2] : memref<128x128xf32, #tpu.memory_space<vmem>>, vector<128x128xf32>
    %cst = arith.constant dense<0.000000e+00> : vector<128x128xf32>
    %7 = tpu.matmul %5, %6, %cst {dimension_numbers = #tpu.dot_dimension_numbers<[1], [0], [0], [1], [0, 0, 1, 1], [], []>} : vector<128x128xf32>, vector<128x128xf32>, vector<128x128xf32> -> vector<128x128xf32>
    %c0_3 = arith.constant 0 : index
    %c0_4 = arith.constant 0 : index
    %8 = vector.load %arg3[%c0_3, %c0_4] : memref<128x128xf32, #tpu.memory_space<vmem>>, vector<128x128xf32>
    tpu.vector_store %arg3[%c0_3, %c0_4], %7 {strides = array<i32>} : memref<128x128xf32, #tpu.memory_space<vmem>>, vector<128x128xf32>,
    return
  }
  func.func @transform_0(%arg0: i32) -> (i32, i32) {
    %c0_i32 = arith.constant 0 : i32
    %c0_i32_0 = arith.constant 0 : i32
    return %arg0, %c0_i32 : i32, i32
  }
  func.func @transform_1(%arg0: i32) -> (i32, i32) {
    %c0_i32 = arith.constant 0 : i32
    %c0_i32_0 = arith.constant 0 : i32
    %c0_i32_1 = arith.constant 0 : i32
    return %c0_i32, %c0_i32_0 : i32, i32
  }
  func.func @transform_2(%arg0: i32) -> (i32, i32) {
    %c0_i32 = arith.constant 0 : i32
    %c0_i32_0 = arith.constant 0 : i32
    return %arg0, %c0_i32 : i32, i32
  }
}

</mosaic_0001>

<bundles_post_ra>
// kernel: tpu_custom_call.1
= control target key start
LH: loop header
LB: loop body
LE: loop exit
PB: predicated region body
PF: predicated region fallthrough
CT: control target
= control target key end

     0   :  { %v518_v2 = vmov 0   ;;  %s646_s0 = inlined_call_operand.vmem [shape: s32[128,1], index: 0, kind: input, shape index: {}]   ;;  %s647_s1 = inlined_call_operand.vmem [shape: f32[128,128], index: 1, kind: input, shape index: {}]   ;;  %s648_s2 = inlined_call_operand.hbm [shape: f32[128,128], index: 2, kind: output, shape index: {}]  }
   0x1   :  { %v13_v0 = vld [vmem:[%s646_s0 + $0x8] sm:$0xff]  ;;  %v12_v1 = vld [vmem:[%s646_s0] sm:$0xff]  ;;  %493 = vset.pattern.permute.xlu1 %v518_v2  ;;  %492 = vset.pattern.permute.xlu0 %v518_v2  ;;  %v128_v8 = vld [vmem:[%s647_s1 + $0x10] sm:$0xff] }
   0x2   :  { %34 = vperm.xlu1 %493, %v13_v0   ;;  %31 = vperm.xlu0 %492, %v12_v1   ;;  %v21_v3 = vld [vmem:[%s646_s0 + $0x48] sm:$0xff]  ;;  %v20_v4 = vld [vmem:[%s646_s0 + $0x40] sm:$0xff]  ;;  %v129_v9 = vld [vmem:[%s647_s1 + $0x18] sm:$0xff] }
   0x3   :  { %v126_v5 = vld [vmem:[%s647_s1] sm:$0xff]  ;;  %v127_v6 = vld [vmem:[%s647_s1 + $0x8] sm:$0xff]  ;;  %v22_v10 = vld [vmem:[%s646_s0 + $0x50] sm:$0xff]  ;;  %v443_v12 = vpack.c.bf16 %v129_v9, %v128_v8 }
   0x4   :  { %v439_v7 = vpack.c.bf16 %v127_v6, %v126_v5  ;;  %v14_v11 = vld [vmem:[%s646_s0 + $0x10] sm:$0xff]  ;;  %v130_v13 = vld [vmem:[%s647_s1 + $0x20] sm:$0xff]  ;;  %v131_v14 = vld [vmem:[%s647_s1 + $0x28] sm:$0xff] }
   0x6   :  { %58 = vperm.xlu1 %493, %v21_v3   ;;  %55 = vperm.xlu0 %492, %v20_v4  }
   0x7   :  { %440 = vmatprep.subr.bf16.mxu0 %v439_v7  ;;  %471 = vmatprep.subr.bf16.mxu1 %v439_v7 }
   0x8   :  { %442 = vmatpush3.bf16.msra.mxu0 %v439_v7  ;;  %479 = vmatpush3.bf16.msra.mxu1 %v439_v7 }
   0xa   :  { %61 = vperm.xlu1 %493, %v22_v10   ;;  %37 = vperm.xlu0 %492, %v14_v11  }
   0xb   :  { %7 = vsyncpa [#allocation3], 0  ;;  %v23_v15 = vld [vmem:[%s646_s0 + $0x58] sm:$0xff]  ;;  %444 = vmatprep.subr.bf16.mxu0 %v443_v12  ;;  %472 = vmatprep.subr.bf16.mxu1 %v443_v12  ;;  %v447_v17 = vpack.c.bf16 %v131_v14, %v130_v13  ;;  %v132_v18 = vld [vmem:[%s647_s1 + $0x30] sm:$0xff]  ;;  %v28_v41 = vlaneseq  ;;  %v519_v45 = vmov 1.0  }
   0xc   :  { %v15_v16 = vld [vmem:[%s646_s0 + $0x18] sm:$0xff]  ;;  %446 = vmatpush3.bf16.msra.mxu0 %v443_v12  ;;  %480 = vmatpush3.bf16.msra.mxu1 %v443_v12  ;;  %v24_v20 = vld [vmem:[%s646_s0 + $0x60] sm:$0xff]  ;;  %v135_v24 = vld [vmem:[%s647_s1 + $0x48] sm:$0xff] }
   0xd   :  { %v133_v19 = vld [vmem:[%s647_s1 + $0x38] sm:$0xff]  ;;  %v16_v21 = vld [vmem:[%s646_s0 + $0x20] sm:$0xff]  ;;  %448 = vmatprep.subr.bf16.mxu0 %v447_v17  ;;  %473 = vmatprep.subr.bf16.mxu1 %v447_v17  ;;  %v25_v25 = vld [vmem:[%s646_s0 + $0x68] sm:$0xff]  ;;  %v29_v42 = vand.u32 127, %v28_v41 }
   0xe   :  { %64 = vperm.xlu1 %493, %v23_v15   ;;  %40 = vperm.xlu0 %492, %v15_v16   ;;  %v451_v22 = vpack.c.bf16 %v133_v19, %v132_v18  ;;  %v134_v23 = vld [vmem:[%s647_s1 + $0x40] sm:$0xff]  ;;  %v17_v26 = vld [vmem:[%s646_s0 + $0x28] sm:$0xff]  ;;  %v136_v28 = vld [vmem:[%s647_s1 + $0x50] sm:$0xff] }
   0xf   :  { %v455_v27 = vpack.c.bf16 %v135_v24, %v134_v23  ;;  %v137_v29 = vld [vmem:[%s647_s1 + $0x58] sm:$0xff]  ;;  %v26_v30 = vld [vmem:[%s646_s0 + $0x70] sm:$0xff]  ;;  %v138_v33 = vld [vmem:[%s647_s1 + $0x60] sm:$0xff] }
  0x10   :  { %450 = vmatpush3.bf16.msra.mxu0 %v447_v17  ;;  %481 = vmatpush3.bf16.msra.mxu1 %v447_v17  ;;  %v18_v31 = vld [vmem:[%s646_s0 + $0x30] sm:$0xff]  ;;  %v459_v32 = vpack.c.bf16 %v137_v29, %v136_v28  ;;  %v139_v34 = vld [vmem:[%s647_s1 + $0x68] sm:$0xff]  ;;  %v27_v35 = vld [vmem:[%s646_s0 + $0x78] sm:$0xff] }
  0x11   :  { %452 = vmatprep.subr.bf16.mxu0 %v451_v22  ;;  %474 = vmatprep.subr.bf16.mxu1 %v451_v22  ;;  %v19_v36 = vld [vmem:[%s646_s0 + $0x38] sm:$0xff]  ;;  %v463_v37 = vpack.c.bf16 %v139_v34, %v138_v33  ;;  %v140_v38 = vld [vmem:[%s647_s1 + $0x70] sm:$0xff]  ;;  %s520_s0 = smov [#allocation2]  }
  0x12   :  { %67 = vperm.xlu1 %493, %v24_v20   ;;  %43 = vperm.xlu0 %492, %v16_v21   ;;  %v141_v39 = vld [vmem:[%s647_s1 + $0x78] sm:$0xff]  ;;  %s308_s1 = sshll.u32 %s520_s0, 4  ;;  %s309_s1 = int_to_ptr.vmem [resolvable:$true] %s308_s1 }
  0x13   :  { %v467_v40 = vpack.c.bf16 %v141_v39, %v140_v38  ;;  %s494_s17 = scalar_lea.vmem %s309_s1, 2048  ;;  %p499_p1 = scmp.lt.s32.totalorder %s309_s1, %s309_s1 }
  0x14   :  { %454 = vmatpush3.bf16.msra.mxu0 %v451_v22  ;;  %482 = vmatpush3.bf16.msra.mxu1 %v451_v22  ;;  %p495_p0 = scmp.ne.s32.totalorder %s309_s1, %s494_s17  ;;  %p500_p2 = scmp.lt.s32.totalorder %s494_s17, %s494_s17 }
  0x15   :  { %456 = vmatprep.subr.bf16.mxu0 %v455_v27  ;;  %475 = vmatprep.subr.bf16.mxu1 %v455_v27 }
  0x16   :  { %70 = vperm.xlu1 %493, %v25_v25   ;;  %46 = vperm.xlu0 %492, %v17_v26   ;;  %p501_p3 = por %p500_p2, %p499_p1 }
  0x18   :  { %458 = vmatpush3.bf16.msra.mxu0 %v455_v27  ;;  %483 = vmatpush3.bf16.msra.mxu1 %v455_v27  ;;  %p502_p4 = pnand %p501_p3, %p495_p0 }
  0x19   :  { %460 = vmatprep.subr.bf16.mxu0 %v459_v32  ;;  %476 = vmatprep.subr.bf16.mxu1 %v459_v32 }
  0x1a   :  { %73 = vperm.xlu1 %493, %v26_v30   ;;  %49 = vperm.xlu0 %492, %v18_v31  }
  0x1c   :  { %462 = vmatpush3.bf16.msra.mxu0 %v459_v32  ;;  %484 = vmatpush3.bf16.msra.mxu1 %v459_v32 }
  0x1d   :  { %464 = vmatprep.subr.bf16.mxu0 %v463_v37  ;;  %477 = vmatprep.subr.bf16.mxu1 %v463_v37 }
  0x1e   :  { %76 = vperm.xlu1 %493, %v27_v35   ;;  %52 = vperm.xlu0 %492, %v19_v36  }
  0x20   :  { %466 = vmatpush3.bf16.msra.mxu0 %v463_v37  ;;  %485 = vmatpush3.bf16.msra.mxu1 %v463_v37 }
  0x21   :  { %468 = vmatprep.subr.bf16.mxu0 %v467_v40  ;;  %478 = vmatprep.subr.bf16.mxu1 %v467_v40 }
  0x24   :  { %470 = vmatpush3.bf16.msra.mxu0 %v467_v40  ;;  %486 = vmatpush3.bf16.msra.mxu1 %v467_v40 }
  0x81   :  { %v35_v43 = vpop.permute.xlu1 %34  ;;  %v32_v44 = vpop.permute.xlu0 %31 }
  0x82   :  { %vm79_vm0 = vcmp.eq.s32.totalorder %v35_v43, %v29_v42  ;;  %vm78_vm1 = vcmp.eq.s32.totalorder %v32_v44, %v29_v42 }
  0x83   :  { %415 = vmatprep.mubr.msk.f32.mxu0 %vm78_vm1, %v519_v45 }
  0x84   :  { %416 = vmatmul.mubr.msk.f32.vlgmr.msra.gmra.mrb[0].mxu0 %vm79_vm0, %v519_v45 }
  0x85   :  { %v59_v46 = vpop.permute.xlu1 %58  ;;  %v56_v47 = vpop.permute.xlu0 %55 }
  0x86   :  { %vm87_vm2 = vcmp.eq.s32.totalorder %v59_v46, %v29_v42  ;;  %vm86_vm3 = vcmp.eq.s32.totalorder %v56_v47, %v29_v42 }
  0x87   :  { %427 = vmatprep.mubr.msk.f32.mxu1 %vm86_vm3, %v519_v45 }
  0x88   :  { %428 = vmatmul.mubr.msk.f32.vlgmr.msra.gmra.mrb[0].mxu1 %vm87_vm2, %v519_v45 }
  0x89   :  { %v62_v48 = vpop.permute.xlu1 %61  ;;  %v38_v49 = vpop.permute.xlu0 %37 }
  0x8a   :  { %vm88_vm4 = vcmp.eq.s32.totalorder %v62_v48, %v29_v42  ;;  %vm80_vm5 = vcmp.eq.s32.totalorder %v38_v49, %v29_v42 }
  0x8b   :  { %418 = vmatprep.mubr.msk.f32.mxu0 %vm80_vm5, %v519_v45  ;;  %430 = vmatprep.mubr.msk.f32.mxu1 %vm88_vm4, %v519_v45 }
  0x8d   :  { %v65_v50 = vpop.permute.xlu1 %64  ;;  %v41_v51 = vpop.permute.xlu0 %40 }
  0x8e   :  { %vm89_vm6 = vcmp.eq.s32.totalorder %v65_v50, %v29_v42  ;;  %vm81_vm7 = vcmp.eq.s32.totalorder %v41_v51, %v29_v42 }
  0x8f   :  { %419 = vmatmul.mubr.msk.f32.gmra.mrb[2].mxu0 %vm81_vm7, %v519_v45  ;;  %431 = vmatmul.mubr.msk.f32.gmra.mrb[2].mxu1 %vm89_vm6, %v519_v45 }
  0x91   :  { %v68_v52 = vpop.permute.xlu1 %67  ;;  %v44_v53 = vpop.permute.xlu0 %43 }
  0x92   :  { %vm90_vm8 = vcmp.eq.s32.totalorder %v68_v52, %v29_v42  ;;  %vm82_vm9 = vcmp.eq.s32.totalorder %v44_v53, %v29_v42 }
  0x93   :  { %421 = vmatprep.mubr.msk.f32.mxu0 %vm82_vm9, %v519_v45  ;;  %433 = vmatprep.mubr.msk.f32.mxu1 %vm90_vm8, %v519_v45 }
  0x95   :  { %v71_v54 = vpop.permute.xlu1 %70  ;;  %v47_v55 = vpop.permute.xlu0 %46 }
  0x96   :  { %vm91_vm10 = vcmp.eq.s32.totalorder %v71_v54, %v29_v42  ;;  %vm83_vm11 = vcmp.eq.s32.totalorder %v47_v55, %v29_v42 }
  0x97   :  { %422 = vmatmul.mubr.msk.f32.gmra.mrb[4].mxu0 %vm83_vm11, %v519_v45  ;;  %434 = vmatmul.mubr.msk.f32.gmra.mrb[4].mxu1 %vm91_vm10, %v519_v45 }
  0x99   :  { %v74_v56 = vpop.permute.xlu1 %73  ;;  %v50_v57 = vpop.permute.xlu0 %49 }
  0x9a   :  { %vm92_vm12 = vcmp.eq.s32.totalorder %v74_v56, %v29_v42  ;;  %vm84_vm13 = vcmp.eq.s32.totalorder %v50_v57, %v29_v42 }
  0x9b   :  { %424 = vmatprep.mubr.msk.f32.mxu0 %vm84_vm13, %v519_v45  ;;  %436 = vmatprep.mubr.msk.f32.mxu1 %vm92_vm12, %v519_v45 }
  0x9d   :  { %v77_v58 = vpop.permute.xlu1 %76  ;;  %v53_v59 = vpop.permute.xlu0 %52 }
  0x9e   :  { %vm93_vm14 = vcmp.eq.s32.totalorder %v77_v58, %v29_v42  ;;  %vm85_vm15 = vcmp.eq.s32.totalorder %v53_v59, %v29_v42 }
  0x9f   :  { %425 = vmatmul.mubr.msk.f32.gmra.mrb[6].mxu0 %vm85_vm15, %v519_v45  ;;  %437 = vmatmul.mubr.msk.f32.gmra.mrb[6].mxu1 %vm93_vm14, %v519_v45 }
 0x157   :  { %v417_v60 = vpop.f32.mrb[0].mxu0 }
 0x158   :  { %288 = vst [vmem:[#allocation2 + $0x8] sm:$0xff] %v417_v60  ;;  %v208_v61 = vpop.f32.mrb[1].mxu0 }
 0x159   :  { %287 = vst [vmem:[#allocation2] sm:$0xff] %v208_v61 }
 0x15b   :  { %v429_v62 = vpop.f32.mrb[0].mxu1 }
 0x15c   :  { %296 = vst [vmem:[#allocation2 + $0x48] sm:$0xff] %v429_v62  ;;  %v248_v63 = vpop.f32.mrb[1].mxu1 }
 0x15d   :  { %295 = vst [vmem:[#allocation2 + $0x40] sm:$0xff] %v248_v63 }
 0x162   :  { %v420_v0 = vpop.f32.mrb[2].mxu0  ;;  %v432_v1 = vpop.f32.mrb[2].mxu1 }
 0x163   :  { %290 = vst [vmem:[#allocation2 + $0x18] sm:$0xff] %v420_v0  ;;  %298 = vst [vmem:[#allocation2 + $0x58] sm:$0xff] %v432_v1  ;;  %v218_v2 = vpop.f32.mrb[3].mxu0  ;;  %v258_v3 = vpop.f32.mrb[3].mxu1 }
 0x164   :  { %289 = vst [vmem:[#allocation2 + $0x10] sm:$0xff] %v218_v2  ;;  %297 = vst [vmem:[#allocation2 + $0x50] sm:$0xff] %v258_v3 }
 0x16a   :  { %v423_v4 = vpop.f32.mrb[4].mxu0  ;;  %v435_v5 = vpop.f32.mrb[4].mxu1 }
 0x16b   :  { %292 = vst [vmem:[#allocation2 + $0x28] sm:$0xff] %v423_v4  ;;  %300 = vst [vmem:[#allocation2 + $0x68] sm:$0xff] %v435_v5  ;;  %v228_v6 = vpop.f32.mrb[5].mxu0  ;;  %v268_v7 = vpop.f32.mrb[5].mxu1 }
 0x16c   :  { %291 = vst [vmem:[#allocation2 + $0x20] sm:$0xff] %v228_v6  ;;  %299 = vst [vmem:[#allocation2 + $0x60] sm:$0xff] %v268_v7 }
 0x172   :  { %v426_v8 = vpop.f32.mrb[6].mxu0  ;;  %v438_v9 = vpop.f32.mrb[6].mxu1 }
 0x173   :  { %294 = vst [vmem:[#allocation2 + $0x38] sm:$0xff] %v426_v8  ;;  %302 = vst [vmem:[#allocation2 + $0x78] sm:$0xff] %v438_v9  ;;  %v238_v10 = vpop.f32.mrb[7].mxu0  ;;  %v278_v11 = vpop.f32.mrb[7].mxu1 }
 0x174   :  { %293 = vst [vmem:[#allocation2 + $0x30] sm:$0xff] %v238_v10  ;;  %301 = vst [vmem:[#allocation2 + $0x70] sm:$0xff] %v278_v11 }
 0x175   :  { %505 = shalt.err (!%p502_p4)
}
 0x176   :  { %s506_s20 = scalar_lea.hbm %s648_s2, 2048 }
 0x177   :  { %p507_p5 = scmp.ne.s32.totalorder %s648_s2, %s506_s20  ;;  %p510_p6 = scmp.lt.u32.totalorder %s506_s20, %s648_s2 }
 0x179   :  { %p512_p7 = pnand %p510_p6, %p507_p5 }
 0x17b   :  { %515 = shalt.err (!%p512_p7)
}
 0x17c   :  { %s521_s25 = smov 128   ;;  %s522_s26 = smov 8  }
 0x17d   :  { %314 = dma.vmem_to_hbm [thread:$0]  %s309_s1, 2048, %s648_s2, [#allocation3], %s521_s25, %s521_s25, %s522_s26  }
 0x17e   :  { %516 = dma.done.wait [#allocation3], 2048  }
 0x17f   :  { %517 = vsyncadd [#allocation3], 4294965248 }
 0x180   :  { %318 = vsyncpa [#allocation3], 1 }

</bundles_post_ra>
